<compile_context>
chip_gen: v7x
topology: tpu7x:2x2x1
jax: 0.10.0
libtpu: 0.0.40
codegen_flags: <defaults>
</compile_context>

<pallas_src>
import jax
import jax.numpy as jnp
from jax.experimental import pallas as pl
from jax.experimental.pallas import tpu as pltpu


def _attn_kernel(q_ref, ques_ref, w1_ref, b1_ref, w2_ref, b2_ref, out_ref):
    # q_ref:    (B_TILE, qlen_p, in_dim) f32
    # ques_ref: (B_TILE, qlen_p, 1) int32   (0 => masked, incl. qlen padding)
    # w1_ref:   (in_dim, inner)      b1_ref: (1, inner)
    # w2_ref:   (inner, 1)           b2_ref: (1, 1) in SMEM
    # out_ref:  (B_TILE, in_dim)
    bt, qlen, in_dim = q_ref.shape

    q3 = q_ref[...]                                     # (bt, qlen, in_dim)
    q2 = q3.reshape(bt * qlen, in_dim)                  # layout-free: qlen % 8 == 0

    # fc1 (weight_norm folded into a plain Linear) + ReLU: one tall MXU matmul
    # for the whole batch tile.
    proj = jnp.dot(q2, w1_ref[...], preferred_element_type=jnp.float32)
    proj = jnp.maximum(proj + b1_ref[...], 0.0)         # (bt*qlen, inner)

    # Scoring linear on tanh(proj): ONE flat MXU matmul (M=bt*qlen, K=inner,
    # N=1) instead of b_tile serialized (1,inner)x(inner,qlen) matmuls.
    score = jnp.dot(jnp.tanh(proj), w2_ref[...],
                    preferred_element_type=jnp.float32)  # (bt*qlen, 1)
    score = score.reshape(bt, qlen, 1) + b2_ref[0, 0]    # layout-free split

    # mask: token id 0 -> -inf (matches masked_fill_(-inf)).
    # NOTE: a fully padded row yields NaN, exactly like the PyTorch module.
    score = jnp.where(ques_ref[...] == 0, -jnp.inf, score)

    # masked softmax over qlen (the per-batch sublane axis).
    m = jnp.max(score, axis=1, keepdims=True)            # (bt, 1, 1)
    e = jnp.exp(score - m)                                # (bt, qlen, 1)
    denom = jnp.sum(e, axis=1, keepdims=True)             # (bt, 1, 1)
    weight = e * pl.reciprocal(denom)                      # (bt, qlen, 1)
    # TODO(synk): training-mode dropout on `weight` not implemented (eval mode).

    # Weighted sum over qlen: VPU lane-broadcast multiply + sublane reduce
    # (no per-batch M=1 MXU matmuls); result is a dense 2D block.
    out = jnp.sum(weight * q3, axis=1)                    # (bt, in_dim)
    out_ref[...] = out.astype(out_ref.dtype)


def _round_up(x, m):
    return ((x + m - 1) // m) * m


def _vmem_capacity_bytes():
    """Per-core VMEM capacity; conservative 64 MiB (v7x-sized) fallback."""
    try:
        cap = getattr(pltpu.get_tpu_info(), "vmem_capacity_bytes", None)
        if cap:
            return int(cap)
    except Exception:
        pass
    return 64 * 1024 * 1024


def _choose_b_tile(qlen_p, in_dim, itemsize, vmem_cap):
    # Per-batch-row VMEM cost, counting (8,128) lane padding of every f32
    # buffer: q + ques double-buffered (~4x padded rows) + fc1/tanh
    # intermediates + the (much smaller) output double buffer.
    lane_pad = _round_up(max(in_dim, 1), 128)
    padded_row = qlen_p * lane_pad * 4
    per_row_vmem = 6 * padded_row + 1024
    raw_row = qlen_p * in_dim * itemsize
    cap_rows = max(8, int(0.4 * vmem_cap) // max(per_row_vmem, 1))
    # >= ~2 MiB raw q per grid step amortizes the ~0.35us fixed step overhead
    # (worth ~0.5 MB of HBM time on v5e up to ~1.1 MB on v7x).
    want_rows = max(8, (2 * 1024 * 1024) // max(raw_row, 1))
    b_tile = min(cap_rows, want_rows, 4096)
    return max(8, (b_tile // 8) * 8)


def simple_self_attention(q, ques, w1, b1, w2, b2, *, b_tile=None, mask=True):
    """q: (b, qlen, in_dim) f32; ques: (b, >=qlen) int -> (b, 1, in_dim) f32."""
    batch, qlen, in_dim = q.shape
    inner_dim = w1.shape[1]

    ques = ques[:, :qlen].astype(jnp.int32)
    if not mask:
        ques = jnp.ones_like(ques)  # mask=False: treat every position as valid

    # Pad qlen to a multiple of 8 (sublane count) so in-kernel (bt, qlen, d)
    # <-> (bt*qlen, d) reshapes are layout-free; padded positions get ques==0
    # so the softmax masks them out.
    qlen_p = max(8, _round_up(qlen, 8))
    if qlen_p != qlen:
        q = jnp.pad(q, ((0, 0), (0, qlen_p - qlen), (0, 0)))
        ques = jnp.pad(ques, ((0, 0), (0, qlen_p - qlen)), constant_values=0)

    vmem_cap = _vmem_capacity_bytes()
    if b_tile is None:
        b_tile = _choose_b_tile(qlen_p, in_dim, q.dtype.itemsize, vmem_cap)
    b_tile = max(8, (int(b_tile) // 8) * 8)
    b_tile = min(b_tile, _round_up(batch, 8))

    grid_b = pl.cdiv(batch, b_tile)
    padded = grid_b * b_tile
    if padded != batch:
        # pad batch rows with q=0 / ques=1 (unmasked) so they stay finite; they
        # are sliced off below.
        q = jnp.pad(q, ((0, padded - batch), (0, 0), (0, 0)))
        ques = jnp.pad(ques, ((0, padded - batch), (0, 0)), constant_values=1)

    ques3 = ques.reshape(padded, qlen_p, 1)
    b1_2d = b1.reshape(1, inner_dim)
    w2_col = w2.reshape(inner_dim, 1)
    b2_2d = b2.reshape(1, 1)

    # Generation-aware VMEM limit: 3/4 of the per-core capacity (48 MiB on
    # v7x's 64 MiB TCs, 96 MiB on v5e/v6e's 128 MiB).
    vmem_limit = int(min(max(vmem_cap * 3 // 4, 32 * 1024 * 1024),
                         100 * 1024 * 1024))

    out2d = pl.pallas_call(
        _attn_kernel,
        out_shape=jax.ShapeDtypeStruct((padded, in_dim), q.dtype),
        grid_spec=pltpu.PrefetchScalarGridSpec(
            num_scalar_prefetch=0,
            grid=(grid_b,),
            in_specs=[
                pl.BlockSpec((b_tile, qlen_p, in_dim), lambda i: (i, 0, 0)),
                pl.BlockSpec((b_tile, qlen_p, 1), lambda i: (i, 0, 0)),
                pl.BlockSpec((in_dim, inner_dim), lambda i: (0, 0)),
                pl.BlockSpec((1, inner_dim), lambda i: (0, 0)),
                pl.BlockSpec((inner_dim, 1), lambda i: (0, 0)),
                pl.BlockSpec(memory_space=pltpu.MemorySpace.SMEM),
            ],
            out_specs=pl.BlockSpec((b_tile, in_dim), lambda i: (i, 0)),
        ),
        compiler_params=pltpu.CompilerParams(
            # TODO(synk): on v7x verify "parallel" shards grid_b across both
            # TensorCores; if not, switch this axis to pltpu.CORE_PARALLEL.
            dimension_semantics=("parallel",),
            vmem_limit_bytes=vmem_limit,
        ),
    )(q, ques3, w1, b1_2d, w2_col, b2_2d)

    out2d = out2d[:batch] if padded != batch else out2d
    return out2d.reshape(batch, 1, in_dim)


def _reference(q, ques, w1, b1, w2, b2):
    proj = jnp.maximum(jnp.einsum("bld,di->bli", q, w1) + b1, 0.0)
    score = jnp.einsum("bli,io->blo", jnp.tanh(proj), w2)[..., 0] + b2[0]
    score = jnp.where(ques == 0, -jnp.inf, score)
    weight = jax.nn.softmax(score, axis=-1)
    return jnp.einsum("bl,bld->bd", weight, q)[:, None, :]


if __name__ == "__main__":
    in_dim, inner_dim = 32, 16

    key = jax.random.PRNGKey(0)
    k_w1, k_b1, k_w2, k_b2, k_data = jax.random.split(key, 5)

    # deterministic synthetic parameters (PyTorch Linear stores (out, in); the
    # kernel uses the transposed (in, out) layout for its matmuls)
    w1 = jax.random.normal(k_w1, (in_dim, inner_dim), dtype=jnp.float32) * 0.1
    b1 = jax.random.normal(k_b1, (inner_dim,), dtype=jnp.float32) * 0.1
    w2 = jax.random.normal(k_w2, (inner_dim, 1), dtype=jnp.float32) * 0.1
    b2 = jax.random.normal(k_b2, (1,), dtype=jnp.float32) * 0.1

    def run_case(batch, qlen, seed, b_tile=None):
        kq, kques = jax.random.split(jax.random.fold_in(k_data, seed))
        q = jax.random.normal(kq, (batch, qlen, in_dim), dtype=jnp.float32)
        # token ids; zeros act as padding that gets masked out
        ques = jax.random.randint(kques, (batch, qlen), 0, 5, dtype=jnp.int32)
        ques = ques.at[:, 0].set(1)  # at least one unmasked position per row

        out = simple_self_attention(q, ques, w1, b1, w2, b2, b_tile=b_tile)
        out = jax.block_until_ready(out)

        ref = _reference(q, ques, w1, b1, w2, b2)
        assert out.shape == (batch, 1, in_dim)
        err = float(jnp.max(jnp.abs(out - ref)))
        assert jnp.allclose(out, ref, atol=1e-5, rtol=1e-5), err

    run_case(batch=2, qlen=8, seed=0)               # single step, batch padding
    run_case(batch=10, qlen=8, seed=1, b_tile=8)    # multi-step grid
    run_case(batch=6, qlen=10, seed=2)              # qlen padded to 16 + masked tail

    print("KERNEL_OK")
</pallas_src>

<mosaic_0001>
module attributes {stable_mosaic.version = 11 : i64} {
  func.func @_attn_kernel(%arg0: i32, %arg1: memref<8x8x32xf32, #tpu.memory_space<vmem>>, %arg2: memref<8x8x1xi32, #tpu.memory_space<vmem>>, %arg3: memref<32x16xf32, #tpu.memory_space<vmem>>, %arg4: memref<1x16xf32, #tpu.memory_space<vmem>>, %arg5: memref<16x1xf32, #tpu.memory_space<vmem>>, %arg6: memref<1x1xf32, #tpu.memory_space<smem>>, %arg7: memref<8x32xf32, #tpu.memory_space<vmem>>) attributes {dimension_semantics = [#tpu.dimension_semantics<parallel>], iteration_bounds = array<i64: 1>, scalar_prefetch = 0 : i64, scratch_operands = 0 : i64, tpu.core_type = #tpu.core_type<tc>, window_params = [{transform_indices = @transform_0, window_bounds = array<i64: 8, 8, 32>}, {transform_indices = @transform_1, window_bounds = array<i64: 8, 8, 1>}, {pipeline_mode = #tpu.pipeline_mode<synchronous>, transform_indices = @transform_2, window_bounds = array<i64: 32, 16>}, {pipeline_mode = #tpu.pipeline_mode<synchronous>, transform_indices = @transform_3, window_bounds = array<i64: 1, 16>}, {pipeline_mode = #tpu.pipeline_mode<synchronous>, transform_indices = @transform_4, window_bounds = array<i64: 16, 1>}, {transform_indices = @transform_5, window_bounds = array<i64: 1, 1>}, {transform_indices = @transform_6, window_bounds = array<i64: 8, 32>}]} {
    %c0 = arith.constant 0 : index
    %c0_0 = arith.constant 0 : index
    %c0_1 = arith.constant 0 : index
    %0 = vector.load %arg1[%c0, %c0_0, %c0_1] : memref<8x8x32xf32, #tpu.memory_space<vmem>>, vector<8x8x32xf32>
    %1 = vector.shape_cast %0 : vector<8x8x32xf32> to vector<64x32xf32>
    %c0_2 = arith.constant 0 : index
    %c0_3 = arith.constant 0 : index
    %2 = vector.load %arg3[%c0_2, %c0_3] : memref<32x16xf32, #tpu.memory_space<vmem>>, vector<32x16xf32>
    %cst = arith.constant dense<0.000000e+00> : vector<64x16xf32>
    %3 = tpu.matmul %1, %2, %cst {dimension_numbers = #tpu.dot_dimension_numbers<[1], [0], [0], [1], [0, 0, 1, 1], [], []>} : vector<64x32xf32>, vector<32x16xf32>, vector<64x16xf32> -> vector<64x16xf32>
    %c0_4 = arith.constant 0 : index
    %c0_5 = arith.constant 0 : index
    %4 = vector.load %arg4[%c0_4, %c0_5] : memref<1x16xf32, #tpu.memory_space<vmem>>, vector<1x16xf32>
    %5 = vector.broadcast %4 : vector<1x16xf32> to vector<64x16xf32>
    %6 = arith.addf %3, %5 : vector<64x16xf32>
    %cst_6 = arith.constant 0.000000e+00 : f32
    %7 = vector.broadcast %cst_6 : f32 to vector<64x16xf32>
    %8 = arith.maximumf %6, %7 : vector<64x16xf32>
    %9 = math.tanh %8 : vector<64x16xf32>
    %c0_7 = arith.constant 0 : index
    %c0_8 = arith.constant 0 : index
    %10 = vector.load %arg5[%c0_7, %c0_8] : memref<16x1xf32, #tpu.memory_space<vmem>>, vector<16x1xf32>
    %cst_9 = arith.constant dense<0.000000e+00> : vector<64x1xf32>
    %11 = tpu.matmul %9, %10, %cst_9 {dimension_numbers = #tpu.dot_dimension_numbers<[1], [0], [0], [1], [0, 0, 1, 1], [], []>} : vector<64x16xf32>, vector<16x1xf32>, vector<64x1xf32> -> vector<64x1xf32>
    %12 = vector.shape_cast %11 : vector<64x1xf32> to vector<8x8x1xf32>
    %c0_10 = arith.constant 0 : index
    %c0_11 = arith.constant 0 : index
    %13 = memref.load %arg6[%c0_10, %c0_11] : memref<1x1xf32, #tpu.memory_space<smem>>
    %14 = vector.broadcast %13 : f32 to vector<8x8x1xf32>
    %15 = arith.addf %12, %14 : vector<8x8x1xf32>
    %c0_12 = arith.constant 0 : index
    %c0_13 = arith.constant 0 : index
    %c0_14 = arith.constant 0 : index
    %16 = vector.load %arg2[%c0_12, %c0_13, %c0_14] : memref<8x8x1xi32, #tpu.memory_space<vmem>>, vector<8x8x1xi32>
    %c0_i32 = arith.constant 0 : i32
    %17 = vector.broadcast %c0_i32 : i32 to vector<8x8x1xi32>
    %18 = arith.cmpi eq, %16, %17 : vector<8x8x1xi32>
    %cst_15 = arith.constant 0xFF800000 : f32
    %19 = vector.broadcast %cst_15 : f32 to vector<8x8x1xf32>
    %20 = arith.select %18, %19, %15 : vector<8x8x1xi1>, vector<8x8x1xf32>
    %cst_16 = arith.constant dense<0xFF800000> : vector<8x1xf32>
    %21 = vector.multi_reduction <maximumf>, %20, %cst_16 [1] : vector<8x8x1xf32> to vector<8x1xf32>
    %22 = vector.shape_cast %21 : vector<8x1xf32> to vector<8x1x1xf32>
    %23 = vector.broadcast %22 : vector<8x1x1xf32> to vector<8x8x1xf32>
    %24 = arith.subf %20, %23 : vector<8x8x1xf32>
    %25 = math.exp %24 : vector<8x8x1xf32>
    %cst_17 = arith.constant dense<0.000000e+00> : vector<8x1xf32>
    %26 = vector.multi_reduction <add>, %25, %cst_17 [1] : vector<8x8x1xf32> to vector<8x1xf32>
    %27 = vector.shape_cast %26 : vector<8x1xf32> to vector<8x1x1xf32>
    %28 = tpu.reciprocal %27 : vector<8x1x1xf32> -> vector<8x1x1xf32>
    %29 = vector.broadcast %28 : vector<8x1x1xf32> to vector<8x8x1xf32>
    %30 = arith.mulf %25, %29 : vector<8x8x1xf32>
    %31 = vector.broadcast %30 : vector<8x8x1xf32> to vector<8x8x32xf32>
    %32 = arith.mulf %31, %0 : vector<8x8x32xf32>
    %cst_18 = arith.constant dense<0.000000e+00> : vector<8x32xf32>
    %33 = vector.multi_reduction <add>, %32, %cst_18 [1] : vector<8x8x32xf32> to vector<8x32xf32>
    %c0_19 = arith.constant 0 : index
    %c0_20 = arith.constant 0 : index
    %34 = vector.load %arg7[%c0_19, %c0_20] : memref<8x32xf32, #tpu.memory_space<vmem>>, vector<8x32xf32>
    tpu.vector_store %arg7[%c0_19, %c0_20], %33 {strides = array<i32>} : memref<8x32xf32, #tpu.memory_space<vmem>>, vector<8x32xf32>,
    return
  }
  func.func @transform_0(%arg0: i32) -> (i32, i32, i32) {
    %c0_i32 = arith.constant 0 : i32
    %c0_i32_0 = arith.constant 0 : i32
    %c0_i32_1 = arith.constant 0 : i32
    return %arg0, %c0_i32, %c0_i32_0 : i32, i32, i32
  }
  func.func @transform_1(%arg0: i32) -> (i32, i32, i32) {
    %c0_i32 = arith.constant 0 : i32
    %c0_i32_0 = arith.constant 0 : i32
    %c0_i32_1 = arith.constant 0 : i32
    return %arg0, %c0_i32, %c0_i32_0 : i32, i32, i32
  }
  func.func @transform_2(%arg0: i32) -> (i32, i32) {
    %c0_i32 = arith.constant 0 : i32
    %c0_i32_0 = arith.constant 0 : i32
    %c0_i32_1 = arith.constant 0 : i32
    return %c0_i32, %c0_i32_0 : i32, i32
  }
  func.func @transform_3(%arg0: i32) -> (i32, i32) {
    %c0_i32 = arith.constant 0 : i32
    %c0_i32_0 = arith.constant 0 : i32
    %c0_i32_1 = arith.constant 0 : i32
    return %c0_i32, %c0_i32_0 : i32, i32
  }
  func.func @transform_4(%arg0: i32) -> (i32, i32) {
    %c0_i32 = arith.constant 0 : i32
    %c0_i32_0 = arith.constant 0 : i32
    %c0_i32_1 = arith.constant 0 : i32
    return %c0_i32, %c0_i32_0 : i32, i32
  }
  func.func @transform_5(%arg0: i32) -> (i32, i32) {
    %c0_i32 = arith.constant 0 : i32
    %c0_i32_0 = arith.constant 0 : i32
    %c0_i32_1 = arith.constant 0 : i32
    return %c0_i32, %c0_i32_0 : i32, i32
  }
  func.func @transform_6(%arg0: i32) -> (i32, i32) {
    %c0_i32 = arith.constant 0 : i32
    %c0_i32_0 = arith.constant 0 : i32
    return %arg0, %c0_i32 : i32, i32
  }
}

</mosaic_0001>

<bundles_post_ra>
// kernel: tpu_custom_call.1
= control target key start
LH: loop header
LB: loop body
LE: loop exit
PB: predicated region body
PF: predicated region fallthrough
CT: control target
= control target key end

     0   :  { %vm44_vm0 = vcmask 261120   ;;  %s1063_s0 = inlined_call_operand.vmem [shape: f32[8,8,32], index: 0, kind: input, shape index: {}]   ;;  %s1064_s1 = inlined_call_operand.vmem [shape: s32[8,8,1], index: 1, kind: input, shape index: {}]   ;;  %s1065_s2 = inlined_call_operand.vmem [shape: f32[32,16], index: 2, kind: input, shape index: {}]   ;;  %s1066_s3 = inlined_call_operand.vmem [shape: f32[1,16], index: 3, kind: input, shape index: {}]   ;;  %s1067_s4 = inlined_call_operand.vmem [shape: f32[16,1], index: 4, kind: input, shape index: {}]   ;;  %s1068_s5 = inlined_call_operand.<no memory space> [shape: f32[1,1], index: 5, kind: input, shape index: {}]   ;;  %s1069_s6 = inlined_call_operand.hbm [shape: f32[8,32], index: 6, kind: output, shape index: {}]  }
   0x1   :  { %v33_v0 = vld [vmem:[%s1065_s2] sm:$0xff]  ;;  %v34_v1 = vld [vmem:[%s1065_s2 + $0x8] sm:$0xff]  ;;  %v35_v2 = vld [vmem:[%s1065_s2 + $0x10] sm:$0xff] }
   0x2   :  { %v726_v3 = vpack.c.bf16 %v34_v1, %v33_v0  ;;  %v36_v4 = vld [vmem:[%s1065_s2 + $0x18] sm:$0xff]  ;;  %v866_v5 = vld [vmem:[%s1063_s0] sm:$0xff] }
   0x3   :  { %v730_v6 = vpack.c.bf16 %v36_v4, %v35_v2  ;;  %698 = vmatprep.mubr.msk.f32.mxu0 %vm44_vm0, %v866_v5 }
   0x4   :  { %727 = vmatprep.subr.bf16.mxu0 %v726_v3 }
   0x5   :  { %729 = vmatpush3.bf16.msra.mxu0 %v726_v3 }
   0x6   :  { %12 = vsyncpa [#allocation4], 0  ;;  %731 = vmatprep.subr.bf16.mxu0 %v730_v6  ;;  %v873_v7 = vld [vmem:[%s1063_s0 + $0x8] sm:$0xff]  ;;  %v878_v8 = vld [vmem:[%s1063_s0 + $0x10] sm:$0xff]  ;;  %vm192_vm1 = vcmask 130048   ;;  %v814_v50 = vmov 0   ;;  %v942_v52 = vstv %s1068_s5 }
   0x7   :  { %v887_v9 = vld [vmem:[%s1063_s0 + $0x18] sm:$0xff]  ;;  %v892_v10 = vld [vmem:[%s1063_s0 + $0x20] sm:$0xff]  ;;  %v901_v11 = vld [vmem:[%s1063_s0 + $0x28] sm:$0xff]  ;;  %740 = vset.pattern.permute.xlu0 %v814_v50  ;;  %741 = vset.pattern.permute.xlu1 %v814_v50  ;;  %vm356_vm3 = vcmask 7168   ;;  %vm621_vm11 = vcmask 1041409   ;;  %vm623_vm12 = vcmask 1042434  }
   0x8   :  { %v906_v12 = vld [vmem:[%s1063_s0 + $0x30] sm:$0xff]  ;;  %v915_v13 = vld [vmem:[%s1063_s0 + $0x38] sm:$0xff]  ;;  %v190_v14 = vld [vmem:[%s1067_s4] sm:$0xff]  ;;  %vm625_vm13 = vcmask 1043459   ;;  %vm627_vm14 = vcmask 1044484   ;;  %vm629_vm15 = vcmask 1045509  }
   0x9   :  { %733 = vmatpush3.bf16.msra.mxu0 %v730_v6  ;;  %v191_v15 = vld [vmem:[%s1067_s4 + $0x8] sm:$0xff]  ;;  %v651_v17 = vld [vmem:[%s1066_s3] ss:$0 sm:$0xff]  ;;  %v335_v57 = vld [vmem:[%s1064_s1 + $0x18] sm:$0xff] }
   0xa   :  { %v734_v16 = vpack.c.bf16 %v191_v15, %v190_v14  ;;  %v333_v51 = vld [vmem:[%s1064_s1 + $0x8] sm:$0xff]  ;;  %v332_v53 = vld [vmem:[%s1064_s1] sm:$0xff]  ;;  %v334_v59 = vld [vmem:[%s1064_s1 + $0x10] sm:$0xff]  ;;  %vm343_vm5 = vcmp.eq.s32.totalorder %v335_v57, 0 }
   0xb   :  { %vm341_vm2 = vcmp.eq.s32.totalorder %v333_v51, 0  ;;  %vm340_vm4 = vcmp.eq.s32.totalorder %v332_v53, 0  ;;  %v337_v0 = vld [vmem:[%s1064_s1 + $0x28] sm:$0xff]  ;;  %vm342_vm6 = vcmp.eq.s32.totalorder %v334_v59, 0  ;;  %v336_v6 = vld [vmem:[%s1064_s1 + $0x20] sm:$0xff] }
   0xc   :  { %699 = vmatmul.mubr.msk.f32.vlgmr.msra.gmra.mrb[0].mxu0 %vm44_vm0, %v873_v7  ;;  %735 = vmatprep.subr.bf16.mxu1 %v734_v16  ;;  %vm345_vm7 = vcmp.eq.s32.totalorder %v337_v0, 0  ;;  %vm344_vm8 = vcmp.eq.s32.totalorder %v336_v6, 0 }
   0xd   :  { %701 = vmatprep.mubr.msk.f32.mxu0 %vm44_vm0, %v878_v8  ;;  %737 = vmatpush3.bf16.msra.mxu1 %v734_v16 }
  0x10   :  { %702 = vmatmul.mubr.msk.f32.gmra.mrb[2].mxu0 %vm44_vm0, %v887_v9 }
  0x11   :  { %704 = vmatprep.mubr.msk.f32.mxu0 %vm44_vm0, %v892_v10 }
  0x14   :  { %705 = vmatmul.mubr.msk.f32.gmra.mrb[4].mxu0 %vm44_vm0, %v901_v11 }
  0x15   :  { %707 = vmatprep.mubr.msk.f32.mxu0 %vm44_vm0, %v906_v12 }
  0x18   :  { %708 = vmatmul.mubr.msk.f32.gmra.mrb[6].mxu0 %vm44_vm0, %v915_v13 }
  0xdf   :  { %v700_v18 = vpop.f32.mrb[0].mxu0 }
  0xe0   :  { %v141_v19 = vadd.f32 %v700_v18, %v651_v17  ;;  %v135_v20 = vpop.f32.mrb[1].mxu0  ;;  %v339_v18 = vld [vmem:[%s1064_s1 + $0x38] sm:$0xff] }
  0xe1   :  { %v136_v21 = vadd.f32 %v651_v17, %v135_v20  ;;  %vm347_vm9 = vcmp.eq.s32.totalorder %v339_v18, 0 }
  0xe2   :  { %v175_v22 = vmax.f32 %v141_v19, 0.0 }
  0xe3   :  { %v174_v23 = vmax.f32 %v136_v21, 0.0  ;;  %v703_v24 = vpop.f32.mrb[2].mxu0 }
  0xe4   :  { %v151_v25 = vadd.f32 %v703_v24, %v651_v17  ;;  %v145_v26 = vpop.f32.mrb[3].mxu0 }
  0xe5   :  { %742 = vtanh.f32 %v174_v23  ;;  %v146_v27 = vadd.f32 %v651_v17, %v145_v26  ;;  %v338_v23 = vld [vmem:[%s1064_s1 + $0x30] sm:$0xff]  ;;  %s815_s1 = smov [#allocation3]  }
  0xe6   :  { %744 = vtanh.f32 %v175_v22  ;;  %v177_v28 = vmax.f32 %v151_v25, 0.0  ;;  %vm346_vm10 = vcmp.eq.s32.totalorder %v338_v23, 0  ;;  %s643_s15 = sshll.u32 %s815_s1, 4  ;;  %s644_s15 = int_to_ptr.vmem [resolvable:$true] %s643_s15 }
  0xe7   :  { %v176_v29 = vmax.f32 %v146_v27, 0.0  ;;  %v706_v30 = vpop.f32.mrb[4].mxu0  ;;  %s790_s16 = scalar_lea.vmem %s644_s15, 128  ;;  %p795_p1 = scmp.lt.s32.totalorder %s644_s15, %s644_s15 }
  0xe8   :  { %v161_v31 = vadd.f32 %v706_v30, %v651_v17  ;;  %v155_v32 = vpop.f32.mrb[5].mxu0  ;;  %p791_p0 = scmp.ne.s32.totalorder %s644_s15, %s790_s16  ;;  %p796_p2 = scmp.lt.s32.totalorder %s790_s16, %s790_s16 }
  0xe9   :  { %746 = vtanh.f32 %v176_v29  ;;  %v156_v33 = vadd.f32 %v651_v17, %v155_v32 }
  0xea   :  { %748 = vtanh.f32 %v177_v28  ;;  %v179_v34 = vmax.f32 %v161_v31, 0.0  ;;  %p797_p3 = por %p796_p2, %p795_p1 }
  0xeb   :  { %v178_v35 = vmax.f32 %v156_v33, 0.0  ;;  %v709_v36 = vpop.f32.mrb[6].mxu0 }
  0xec   :  { %750 = vtanh.f32 %v179_v34  ;;  %v171_v37 = vadd.f32 %v709_v36, %v651_v17  ;;  %v165_v38 = vpop.f32.mrb[7].mxu0  ;;  %p798_p4 = pnand %p797_p3, %p791_p0 }
  0xed   :  { %752 = vtanh.f32 %v178_v35  ;;  %v166_v39 = vadd.f32 %v651_v17, %v165_v38 }
  0xee   :  { %v181_v40 = vmax.f32 %v171_v37, 0.0 }
  0xef   :  { %v743_v41 = vpop.eup %742  ;;  %v180_v42 = vmax.f32 %v166_v39, 0.0 }
  0xf0   :  { %v745_v43 = vpop.eup %744  ;;  %754 = vtanh.f32 %v181_v40  ;;  %714 = vmatprep.mubr.msk.f32.mxu1 %vm192_vm1, %v743_v41 }
  0xf1   :  { %756 = vtanh.f32 %v180_v42  ;;  %715 = vmatmul.mubr.msk.f32.vlgmr.msra.gmra.mrb[0].mxu1 %vm192_vm1, %v745_v43 }
  0xf3   :  { %v747_v44 = vpop.eup %746 }
  0xf4   :  { %v749_v45 = vpop.eup %748  ;;  %717 = vmatprep.mubr.msk.f32.mxu1 %vm192_vm1, %v747_v44 }
  0xf5   :  { %718 = vmatmul.mubr.msk.f32.gmra.mrb[2].mxu1 %vm192_vm1, %v749_v45 }
  0xf6   :  { %v751_v46 = vpop.eup %750 }
  0xf7   :  { %v753_v47 = vpop.eup %752 }
  0xf8   :  { %720 = vmatprep.mubr.msk.f32.mxu1 %vm192_vm1, %v753_v47 }
  0xf9   :  { %721 = vmatmul.mubr.msk.f32.gmra.mrb[4].mxu1 %vm192_vm1, %v751_v46 }
  0xfa   :  { %v755_v48 = vpop.eup %754 }
  0xfb   :  { %v757_v49 = vpop.eup %756 }
  0xfc   :  { %723 = vmatprep.mubr.msk.f32.mxu1 %vm192_vm1, %v757_v49 }
  0xfd   :  { %724 = vmatmul.mubr.msk.f32.gmra.mrb[6].mxu1 %vm192_vm1, %v755_v48  ;;  %vm631_vm1 = vcmask 1046534  }
 0x1c4   :  { %v716_v54 = vpop.f32.mrb[0].mxu1 }
 0x1c5   :  { %v325_v55 = vadd.f32 %v716_v54, %v942_v52  ;;  %v283_v56 = vpop.f32.mrb[1].mxu1 }
 0x1c6   :  { %v324_v58 = vadd.f32 %v942_v52, %v283_v56 }
 0x1c7   :  { %v955_v60 = vsel %vm341_vm2, -inf, %v325_v55  ;;  %vm633_vm2 = vcmask 1047559  }
 0x1c8   :  { %v364_v61 = vsel %vm356_vm3, %v955_v60, -inf  ;;  %v959_v62 = vsel %vm340_vm4, -inf, %v324_v58  ;;  %v719_v63 = vpop.f32.mrb[2].mxu1 }
 0x1c9   :  { %v365_v1 = vrot.slane %v364_v61, 4  ;;  %v357_v2 = vsel %vm356_vm3, %v959_v62, -inf  ;;  %v327_v3 = vadd.f32 %v719_v63, %v942_v52  ;;  %v293_v4 = vpop.f32.mrb[3].mxu1 }
 0x1ca   :  { %v358_v14 = vrot.slane %v357_v2, 4  ;;  %v326_v15 = vadd.f32 %v942_v52, %v293_v4 }
 0x1cb   :  { %v366_v16 = vmax.f32 %v364_v61, %v365_v1  ;;  %v971_v17 = vsel %vm343_vm5, -inf, %v327_v3 }
 0x1cc   :  { %v359_v19 = vmax.f32 %v357_v2, %v358_v14  ;;  %v378_v20 = vsel %vm356_vm3, %v971_v17, -inf  ;;  %v978_v21 = vsel %vm342_vm6, -inf, %v326_v15  ;;  %v722_v22 = vpop.f32.mrb[4].mxu1 }
 0x1cd   :  { %v367_v24 = vrot.slane %v366_v16, 2  ;;  %v379_v25 = vrot.slane %v378_v20, 4  ;;  %v371_v26 = vsel %vm356_vm3, %v978_v21, -inf  ;;  %v329_v27 = vadd.f32 %v722_v22, %v942_v52  ;;  %v303_v28 = vpop.f32.mrb[5].mxu1 }
 0x1ce   :  { %v360_v29 = vrot.slane %v359_v19, 2  ;;  %v372_v30 = vrot.slane %v371_v26, 4  ;;  %v328_v31 = vadd.f32 %v942_v52, %v303_v28 }
 0x1cf   :  { %v368_v32 = vmax.f32 %v366_v16, %v367_v24  ;;  %v380_v33 = vmax.f32 %v378_v20, %v379_v25  ;;  %v353_v34 = vsel %vm345_vm7, -inf, %v329_v27 }
 0x1d0   :  { %v361_v35 = vmax.f32 %v359_v19, %v360_v29  ;;  %v373_v36 = vmax.f32 %v371_v26, %v372_v30  ;;  %v392_v37 = vsel %vm356_vm3, %v353_v34, -inf  ;;  %v352_v38 = vsel %vm344_vm8, -inf, %v328_v31  ;;  %v725_v39 = vpop.f32.mrb[6].mxu1 }
 0x1d1   :  { %v369_v40 = vrot.slane %v368_v32, 1  ;;  %v381_v41 = vrot.slane %v380_v33, 2  ;;  %v393_v42 = vrot.slane %v392_v37, 4  ;;  %v385_v43 = vsel %vm356_vm3, %v352_v38, -inf  ;;  %v313_v44 = vpop.f32.mrb[7].mxu1 }
 0x1d2   :  { %v362_v45 = vrot.slane %v361_v35, 1  ;;  %v374_v46 = vrot.slane %v373_v36, 2  ;;  %v386_v47 = vrot.slane %v385_v43, 4  ;;  %v331_v48 = vadd.f32 %v725_v39, %v942_v52 }
 0x1d3   :  { %v370_v49 = vmax.f32 %v368_v32, %v369_v40  ;;  %v382_v50 = vmax.f32 %v380_v33, %v381_v41  ;;  %v394_v51 = vmax.f32 %v392_v37, %v393_v42  ;;  %v330_v53 = vadd.f32 %v942_v52, %v313_v44 }
 0x1d4   :  { %v363_v54 = vmax.f32 %v361_v35, %v362_v45  ;;  %v375_v55 = vmax.f32 %v373_v36, %v374_v46  ;;  %v387_v56 = vmax.f32 %v385_v43, %v386_v47  ;;  %v355_v57 = vsel %vm347_vm9, -inf, %v331_v48 }
 0x1d5   :  { %v414_v58 = vsub.f32 %v955_v60, %v370_v49  ;;  %v383_v59 = vrot.slane %v382_v50, 1  ;;  %v395_v61 = vrot.slane %v394_v51, 2  ;;  %v406_v63 = vsel %vm356_vm3, %v355_v57, -inf }
 0x1d6   :  { %v413_v0 = vsub.f32 %v959_v62, %v363_v54  ;;  %v376_v1 = vrot.slane %v375_v55, 1  ;;  %v388_v2 = vrot.slane %v387_v56, 2  ;;  %v407_v3 = vrot.slane %v406_v63, 4 }
 0x1d7   :  { %v423_v4 = vmul.f32 1.442695, %v414_v58  ;;  %v384_v6 = vmax.f32 %v382_v50, %v383_v59  ;;  %v396_v14 = vmax.f32 %v394_v51, %v395_v61  ;;  %v354_v52 = vsel %vm346_vm10, -inf, %v330_v53 }
 0x1d8   :  { %v421_v15 = vmul.f32 1.442695, %v413_v0  ;;  %v377_v16 = vmax.f32 %v375_v55, %v376_v1  ;;  %v389_v18 = vmax.f32 %v387_v56, %v388_v2  ;;  %v408_v19 = vmax.f32 %v406_v63, %v407_v3 }
 0x1d9   :  { %758 = vpow2.f32 %v423_v4  ;;  %v416_v60 = vsub.f32 %v971_v17, %v384_v6  ;;  %v397_v20 = vrot.slane %v396_v14, 1  ;;  %v399_v22 = vsel %vm356_vm3, %v354_v52, -inf }
 0x1da   :  { %760 = vpow2.f32 %v421_v15  ;;  %v415_v62 = vsub.f32 %v978_v21, %v377_v16  ;;  %v390_v24 = vrot.slane %v389_v18, 1  ;;  %v409_v25 = vrot.slane %v408_v19, 2 }
 0x1db   :  { %v427_v26 = vmul.f32 1.442695, %v416_v60  ;;  %v398_v27 = vmax.f32 %v396_v14, %v397_v20  ;;  %v400_v28 = vrot.slane %v399_v22, 4 }
 0x1dc   :  { %v425_v23 = vmul.f32 1.442695, %v415_v62  ;;  %v391_v29 = vmax.f32 %v389_v18, %v390_v24  ;;  %v410_v30 = vmax.f32 %v408_v19, %v409_v25 }
 0x1dd   :  { %762 = vpow2.f32 %v427_v26  ;;  %v418_v31 = vsub.f32 %v353_v34, %v398_v27  ;;  %v401_v32 = vmax.f32 %v399_v22, %v400_v28 }
 0x1de   :  { %764 = vpow2.f32 %v425_v23  ;;  %v417_v33 = vsub.f32 %v352_v38, %v391_v29  ;;  %v411_v17 = vrot.slane %v410_v30, 1 }
 0x1df   :  { %v431_v35 = vmul.f32 1.442695, %v418_v31  ;;  %v402_v36 = vrot.slane %v401_v32, 2 }
 0x1e0   :  { %v429_v37 = vmul.f32 1.442695, %v417_v33  ;;  %v412_v39 = vmax.f32 %v410_v30, %v411_v17 }
 0x1e1   :  { %766 = vpow2.f32 %v431_v35  ;;  %v403_v21 = vmax.f32 %v401_v32, %v402_v36 }
 0x1e2   :  { %768 = vpow2.f32 %v429_v37  ;;  %v420_v40 = vsub.f32 %v355_v57, %v412_v39 }
 0x1e3   :  { %v1001_v41 = vpop.eup %758  ;;  %v404_v42 = vrot.slane %v403_v21, 1 }
 0x1e4   :  { %v1003_v43 = vpop.eup %760  ;;  %v444_v34 = vsel %vm356_vm3, %v1001_v41, 0.0  ;;  %v435_v44 = vmul.f32 1.442695, %v420_v40 }
 0x1e5   :  { %v445_v45 = vrot.slane %v444_v34, 4  ;;  %v437_v38 = vsel %vm356_vm3, %v1003_v43, 0.0  ;;  %v405_v46 = vmax.f32 %v403_v21, %v404_v42 }
 0x1e6   :  { %v438_v47 = vrot.slane %v437_v38, 4  ;;  %770 = vpow2.f32 %v435_v44 }
 0x1e7   :  { %v1009_v48 = vpop.eup %762  ;;  %v446_v49 = vadd.f32 %v445_v45, %v444_v34  ;;  %v419_v50 = vsub.f32 %v354_v52, %v405_v46 }
 0x1e8   :  { %v1011_v51 = vpop.eup %764  ;;  %v439_v53 = vadd.f32 %v438_v47, %v437_v38  ;;  %v458_v54 = vsel %vm356_vm3, %v1009_v48, 0.0 }
 0x1e9   :  { %v459_v55 = vrot.slane %v458_v54, 4  ;;  %v451_v56 = vsel %vm356_vm3, %v1011_v51, 0.0  ;;  %v433_v57 = vmul.f32 1.442695, %v419_v50  ;;  %v447_v58 = vrot.slane %v446_v49, 2 }
 0x1ea   :  { %v440_v59 = vrot.slane %v439_v53, 2  ;;  %v452_v61 = vrot.slane %v451_v56, 4 }
 0x1eb   :  { %v1017_v63 = vpop.eup %766  ;;  %v460_v0 = vadd.f32 %v459_v55, %v458_v54  ;;  %772 = vpow2.f32 %v433_v57  ;;  %v448_v1 = vadd.f32 %v447_v58, %v446_v49 }
 0x1ec   :  { %v1019_v2 = vpop.eup %768  ;;  %v453_v3 = vadd.f32 %v452_v61, %v451_v56  ;;  %v472_v4 = vsel %vm356_vm3, %v1017_v63, 0.0  ;;  %v441_v6 = vadd.f32 %v440_v59, %v439_v53 }
 0x1ed   :  { %v473_v14 = vrot.slane %v472_v4, 4  ;;  %v465_v52 = vsel %vm356_vm3, %v1019_v2, 0.0  ;;  %v449_v15 = vrot.slane %v448_v1, 1  ;;  %v461_v16 = vrot.slane %v460_v0, 2 }
 0x1ee   :  { %v454_v18 = vrot.slane %v453_v3, 2  ;;  %v466_v19 = vrot.slane %v465_v52, 4  ;;  %v442_v60 = vrot.slane %v441_v6, 1 }
 0x1ef   :  { %v474_v20 = vadd.f32 %v473_v14, %v472_v4  ;;  %v450_v22 = vadd.f32 %v449_v15, %v448_v1  ;;  %v462_v62 = vadd.f32 %v461_v16, %v460_v0 }
 0x1f0   :  { %v771_v24 = vpop.eup %770  ;;  %v467_v25 = vadd.f32 %v466_v19, %v465_v52  ;;  %v443_v26 = vadd.f32 %v442_v60, %v441_v6  ;;  %v455_v27 = vadd.f32 %v454_v18, %v453_v3 }
 0x1f1   :  { %v475_v28 = vrot.slane %v474_v20, 2  ;;  %v486_v23 = vsel %vm356_vm3, %v771_v24, 0.0  ;;  %774 = vrcp.f32 %v450_v22  ;;  %v463_v29 = vrot.slane %v462_v62, 1 }
 0x1f2   :  { %v468_v30 = vrot.slane %v467_v25, 2  ;;  %v487_v31 = vrot.slane %v486_v23, 4  ;;  %v456_v32 = vrot.slane %v455_v27, 1  ;;  %776 = vrcp.f32 %v443_v26 }
 0x1f3   :  { %v464_v33 = vadd.f32 %v463_v29, %v462_v62  ;;  %v476_v17 = vadd.f32 %v475_v28, %v474_v20 }
 0x1f4   :  { %v488_v35 = vadd.f32 %v487_v31, %v486_v23  ;;  %v457_v36 = vadd.f32 %v456_v32, %v455_v27  ;;  %v469_v37 = vadd.f32 %v468_v30, %v467_v25 }
 0x1f5   :  { %v773_v39 = vpop.eup %772  ;;  %778 = vrcp.f32 %v464_v33  ;;  %v477_v21 = vrot.slane %v476_v17, 1 }
 0x1f6   :  { %v489_v40 = vrot.slane %v488_v35, 2  ;;  %v479_v42 = vsel %vm356_vm3, %v773_v39, 0.0  ;;  %v470_v34 = vrot.slane %v469_v37, 1  ;;  %780 = vrcp.f32 %v457_v36 }
 0x1f7   :  { %v480_v44 = vrot.slane %v479_v42, 4  ;;  %v478_v45 = vadd.f32 %v477_v21, %v476_v17 }
 0x1f8   :  { %v471_v38 = vadd.f32 %v470_v34, %v469_v37  ;;  %v490_v46 = vadd.f32 %v489_v40, %v488_v35 }
 0x1f9   :  { %v481_v47 = vadd.f32 %v480_v44, %v479_v42 }
 0x1fa   :  { %782 = vrcp.f32 %v471_v38  ;;  %v491_v49 = vrot.slane %v490_v46, 1 }
 0x1fb   :  { %v775_v50 = vpop.eup %774  ;;  %v482_v53 = vrot.slane %v481_v47, 2  ;;  %784 = vrcp.f32 %v478_v45 }
 0x1fc   :  { %v502_v54 = vmul.f32 %v775_v50, %v1001_v41  ;;  %v492_v55 = vadd.f32 %v491_v49, %v490_v46  ;;  %v777_v56 = vpop.eup %776 }
 0x1fd   :  { %v483_v57 = vadd.f32 %v482_v53, %v481_v47  ;;  %v501_v61 = vmul.f32 %v777_v56, %v1003_v43 }
 0x1fe   :  { %516 = vperm.xlu0 %740, %v502_v54   ;;  %786 = vrcp.f32 %v492_v55 }
 0x1ff   :  { %v779_v58 = vpop.eup %778  ;;  %v484_v59 = vrot.slane %v483_v57, 1 }
 0x200   :  { %v504_v0 = vmul.f32 %v779_v58, %v1009_v48  ;;  %v781_v1 = vpop.eup %780 }
 0x201   :  { %v485_v3 = vadd.f32 %v484_v59, %v483_v57  ;;  %v503_v6 = vmul.f32 %v781_v1, %v1011_v51 }
 0x202   :  { %511 = vperm.xlu0 %740, %v501_v61   ;;  %526 = vperm.xlu1 %741, %v504_v0  }
 0x203   :  { %788 = vrcp.f32 %v485_v3 }
 0x204   :  { %v783_v4 = vpop.eup %782 }
 0x205   :  { %v785_v41 = vpop.eup %784  ;;  %v505_v14 = vmul.f32 %v783_v4, %v1019_v2 }
 0x206   :  { %521 = vperm.xlu1 %741, %v503_v6   ;;  %v506_v52 = vmul.f32 %v785_v41, %v1017_v63 }
 0x207   :  { %531 = vperm.xlu0 %740, %v505_v14  }
 0x208   :  { %v787_v15 = vpop.eup %786 }
 0x209   :  { %v508_v43 = vmul.f32 %v787_v15, %v771_v24 }
 0x20a   :  { %536 = vperm.xlu1 %741, %v506_v52  }
 0x20d   :  { %v789_v16 = vpop.eup %788 }
 0x20e   :  { %v507_v48 = vmul.f32 %v789_v16, %v773_v39  ;;  %546 = vperm.xlu1 %741, %v508_v43  }
 0x210   :  { %541 = vperm.xlu0 %740, %v507_v48  }
 0x27d   :  { %v517_v18 = vpop.permute.xlu0 %516 }
 0x27e   :  { %v550_v19 = vmul.f32 %v517_v18, %v873_v7 }
 0x280   :  { %v564_v60 = vsel %vm44_vm0, %v550_v19, 0.0 }
 0x281   :  { %v565_v51 = vrot.slane %v564_v60, 4  ;;  %v512_v20 = vpop.permute.xlu0 %511  ;;  %v527_v22 = vpop.permute.xlu1 %526 }
 0x282   :  { %v549_v2 = vmul.f32 %v512_v20, %v866_v5  ;;  %v552_v62 = vmul.f32 %v527_v22, %v887_v9 }
 0x283   :  { %v566_v63 = vadd.f32 %v565_v51, %v564_v60 }
 0x284   :  { %v557_v25 = vsel %vm44_vm0, %v549_v2, 0.0  ;;  %v578_v24 = vsel %vm44_vm0, %v552_v62, 0.0 }
 0x285   :  { %v558_v26 = vrot.slane %v557_v25, 4  ;;  %v579_v27 = vrot.slane %v578_v24, 4  ;;  %v522_v28 = vpop.permute.xlu1 %521  ;;  %v567_v23 = vrot.slane %v566_v63, 2 }
 0x286   :  { %v551_v7 = vmul.f32 %v522_v28, %v878_v8  ;;  %v532_v29 = vpop.permute.xlu0 %531 }
 0x287   :  { %v559_v30 = vadd.f32 %v558_v26, %v557_v25  ;;  %v580_v31 = vadd.f32 %v579_v27, %v578_v24  ;;  %v553_v32 = vmul.f32 %v532_v29, %v892_v10  ;;  %v568_v36 = vadd.f32 %v567_v23, %v566_v63 }
 0x288   :  { %v571_v5 = vsel %vm44_vm0, %v551_v7, 0.0 }
 0x289   :  { %v560_v33 = vrot.slane %v559_v30, 2  ;;  %v581_v9 = vrot.slane %v580_v31, 2  ;;  %v572_v17 = vrot.slane %v571_v5, 4  ;;  %v537_v35 = vpop.permute.xlu1 %536  ;;  %v585_v37 = vsel %vm44_vm0, %v553_v32, 0.0 }
 0x28a   :  { %v554_v39 = vmul.f32 %v537_v35, %v901_v11  ;;  %v586_v8 = vrot.slane %v585_v37, 4  ;;  %v569_v46 = vrot.slane %v568_v36, 1 }
 0x28b   :  { %v561_v21 = vadd.f32 %v560_v33, %v559_v30  ;;  %v582_v40 = vadd.f32 %v581_v9, %v580_v31  ;;  %v573_v42 = vadd.f32 %v572_v17, %v571_v5 }
 0x28c   :  { %v592_v34 = vsel %vm44_vm0, %v554_v39, 0.0  ;;  %v587_v47 = vadd.f32 %v586_v8, %v585_v37  ;;  %v570_v1 = vadd.f32 %v569_v46, %v568_v36 }
 0x28d   :  { %v562_v44 = vrot.slane %v561_v21, 1  ;;  %v574_v45 = vrot.slane %v573_v42, 2  ;;  %v593_v10 = vrot.slane %v592_v34, 4  ;;  %v547_v38 = vpop.permute.xlu1 %546  ;;  %v583_v50 = vrot.slane %v582_v40, 1 }
 0x28e   :  { %v556_v49 = vmul.f32 %v547_v38, %v915_v13  ;;  %v588_v56 = vrot.slane %v587_v47, 2 }
 0x28f   :  { %v575_v53 = vadd.f32 %v574_v45, %v573_v42  ;;  %v594_v54 = vadd.f32 %v593_v10, %v592_v34  ;;  %v542_v55 = vpop.permute.xlu0 %541  ;;  %v563_v11 = vadd.f32 %v562_v44, %v561_v21  ;;  %v584_v15 = vadd.f32 %v583_v50, %v582_v40 }
 0x290   :  { %v555_v57 = vmul.f32 %v542_v55, %v906_v12  ;;  %v606_v58 = vsel %vm44_vm0, %v556_v49, 0.0  ;;  %v589_v3 = vadd.f32 %v588_v56, %v587_v47 }
 0x291   :  { %v576_v59 = vrot.slane %v575_v53, 1  ;;  %v595_v61 = vrot.slane %v594_v54, 2  ;;  %v607_v0 = vrot.slane %v606_v58, 4  ;;  %v622_v52 = vsel %vm621_vm11, %v570_v1, %v563_v11 }
 0x292   :  { %v599_v4 = vsel %vm44_vm0, %v555_v57, 0.0  ;;  %v590_v43 = vrot.slane %v589_v3, 1 }
 0x293   :  { %v577_v13 = vadd.f32 %v576_v59, %v575_v53  ;;  %v596_v6 = vadd.f32 %v595_v61, %v594_v54  ;;  %v600_v41 = vrot.slane %v599_v4, 4  ;;  %v608_v14 = vadd.f32 %v607_v0, %v606_v58 }
 0x294   :  { %v591_v19 = vadd.f32 %v590_v43, %v589_v3 }
 0x295   :  { %v624_v12 = vsel %vm623_vm12, %v577_v13, %v622_v52  ;;  %v597_v16 = vrot.slane %v596_v6, 1  ;;  %v601_v48 = vadd.f32 %v600_v41, %v599_v4  ;;  %v609_v18 = vrot.slane %v608_v14, 2 }
 0x296   :  { %v626_v60 = vsel %vm625_vm13, %v584_v15, %v624_v12 }
 0x297   :  { %v602_v51 = vrot.slane %v601_v48, 2  ;;  %v610_v20 = vadd.f32 %v609_v18, %v608_v14  ;;  %v598_v22 = vadd.f32 %v597_v16, %v596_v6  ;;  %v628_v63 = vsel %vm627_vm14, %v591_v19, %v626_v60 }
 0x299   :  { %v603_v2 = vadd.f32 %v602_v51, %v601_v48  ;;  %v611_v62 = vrot.slane %v610_v20, 1  ;;  %v630_v26 = vsel %vm629_vm15, %v598_v22, %v628_v63 }
 0x29b   :  { %v604_v25 = vrot.slane %v603_v2, 1  ;;  %v612_v24 = vadd.f32 %v611_v62, %v610_v20 }
 0x29d   :  { %v605_v27 = vadd.f32 %v604_v25, %v603_v2 }
 0x29f   :  { %v632_v28 = vsel %vm631_vm1, %v605_v27, %v630_v26 }
 0x2a0   :  { %v634_v23 = vsel %vm633_vm2, %v612_v24, %v632_v28 }
 0x2a1   :  { %636 = vst.msk [vmem:[#allocation3] sm:$0xff] %vm44_vm0, %v634_v23 }
 0x2a2   :  { %801 = shalt.err (!%p798_p4)
}
 0x2a3   :  { %s802_s19 = scalar_lea.hbm %s1069_s6, 128 }
 0x2a4   :  { %p803_p5 = scmp.ne.s32.totalorder %s1069_s6, %s802_s19  ;;  %p806_p6 = scmp.lt.u32.totalorder %s802_s19, %s1069_s6 }
 0x2a6   :  { %p808_p7 = pnand %p806_p6, %p803_p5 }
 0x2a8   :  { %811 = shalt.err (!%p808_p7)
}
 0x2a9   :  { %646 = dma.vmem_to_hbm [thread:$0]  %s644_s15, 128, %s1069_s6, [#allocation4]  }
 0x2aa   :  { %812 = dma.done.wait [#allocation4], 128  }
 0x2ab   :  { %813 = vsyncadd [#allocation4], 4294967168 }
 0x2ac   :  { %650 = vsyncpa [#allocation4], 1 }

</bundles_post_ra>
